<compile_context>
chip_gen: v5e
topology: v5e:2x2
jax: 0.10.0
libtpu: 0.0.40
codegen_flags: <defaults>
</compile_context>

<pallas_src>
from functools import partial

import jax
import jax.numpy as jnp
from jax.experimental import pallas as pl
from jax.experimental.pallas import tpu as pltpu


def _gate_partial_kernel(x_ref, wg_ref, bg_ref, masked_ref, partial_ref, *,
                         n_true, tile_n, num_experts):
    """Pass 1: per token tile -> masked top-1 gate scores (unpadded lanes)
    plus per-tile partial column sums (for the global denominator)."""
    i = pl.program_id(0)
    x = x_ref[...]
    logits = jnp.dot(x, wg_ref[...], preferred_element_type=jnp.float32)
    logits = logits + bg_ref[...]                                     # (TN, Ep)
    lmax = jnp.max(logits, axis=-1, keepdims=True)
    p = jnp.exp(logits - lmax)
    rowsum = jnp.sum(p, axis=-1, keepdims=True)                       # (TN, 1)
    # Top-1 softmax value per token is exp(lmax - lmax)/rowsum == 1/rowsum at
    # argmax(logits); argmax on logits has identical tie-breaking (softmax is
    # monotonic), so we never form the full softmax / per-element divide.
    row_val = pl.reciprocal(rowsum, approx=False)                     # (TN, 1)
    idx = jnp.argmax(logits, axis=-1)[:, None]                        # (TN, 1)
    lanes = jax.lax.broadcasted_iota(jnp.int32, logits.shape, 1)
    rows = jax.lax.broadcasted_iota(jnp.int32, logits.shape, 0) + i * tile_n
    # Mask token-padding rows (last, partially out-of-bounds tile) so they do
    # not pollute the global denominator; their output writes are dropped
    # anyway by Pallas because they are out of bounds.
    valid = (lanes == idx) & (rows < n_true)
    masked = jnp.where(valid, row_val, 0.0)                           # (TN, Ep)
    partial_ref[...] = jnp.sum(masked, axis=0, keepdims=True)[None]   # (1,1,Ep)
    masked_ref[...] = masked[:, :num_experts]                         # (TN, E)


def _gate_scale_kernel(masked_ref, scale_ref, gate_ref):
    """Pass 2: purely DMA-bound broadcast multiply by the precomputed scale."""
    gate_ref[...] = masked_ref[...] * scale_ref[...]


def switch_gate_forward(x, wg, bg, *, capacity_factor=1.0, epsilon=1e-6,
                        use_aux_loss=False, tile_n=1024):
    """Pallas implementation of SwitchGate.forward. Returns (gate_scores, loss).

    bg may be shape (num_experts,) (torch nn.Linear layout) or (1, num_experts).
    """
    n, dim = x.shape
    num_experts = wg.shape[1]
    # torch: capacity = int(capacity_factor * x.size(0))
    capacity = float(int(capacity_factor * n))
    bg = jnp.asarray(bg).reshape(1, num_experts)

    # ---- lane-dense expert axis for the in-kernel compute only ----
    ep = pl.cdiv(num_experts, 128) * 128
    if ep != num_experts:
        wg = jnp.pad(wg, ((0, 0), (0, ep - num_experts)))
        bg = jnp.pad(bg, ((0, 0), (0, ep - num_experts)), constant_values=-1e30)

    # ---- token tile selection ----
    # Large tiles amortize the ~0.35us per-grid-step overhead; target >= 2 grid
    # tiles when N allows so the "parallel" axis can shard across both
    # TensorCores on v7x. No row padding of x: the last tile is handled with
    # in-kernel row masking + Pallas' clamped writeback.
    tn_cap = max(8, (tile_n // 8) * 8)
    tn = min(tn_cap, max(8, ((pl.cdiv(n, 2) + 7) // 8) * 8))

    itemsize = jnp.dtype(x.dtype).itemsize

    def _vmem_est(t):
        return (2 * t * dim * itemsize          # x tile, double-buffered
                + 2 * t * num_experts * 4       # masked out tile, double-buffered
                + dim * ep * 4                  # resident gate weight
                + 4 * ep * 4                    # bias + partials blocks
                + (1 << 20))                    # slack
    while tn > 8 and _vmem_est(tn) > 40 * 1024 * 1024:
        tn = max(8, ((tn // 2) // 8) * 8)

    nt = pl.cdiv(n, tn)
    vmem_limit = int(min(max(2 * _vmem_est(tn), 32 * 1024 * 1024),
                         60 * 1024 * 1024))
    cparams = pltpu.CompilerParams(dimension_semantics=("parallel",),
                                   vmem_limit_bytes=vmem_limit)

    f32 = jnp.float32

    # -------- pass 1: masked top-1 scores + per-tile partial column sums --------
    masked, partials = pl.pallas_call(
        partial(_gate_partial_kernel, n_true=n, tile_n=tn,
                num_experts=num_experts),
        out_shape=(jax.ShapeDtypeStruct((n, num_experts), f32),
                   jax.ShapeDtypeStruct((nt, 1, ep), f32)),
        grid_spec=pltpu.PrefetchScalarGridSpec(
            num_scalar_prefetch=0,
            grid=(nt,),
            in_specs=[
                pl.BlockSpec((tn, dim), lambda i: (i, 0)),       # x token tile
                pl.BlockSpec((dim, ep), lambda i: (0, 0)),       # gate weight
                pl.BlockSpec((1, ep), lambda i: (0, 0)),         # gate bias
            ],
            out_specs=[
                pl.BlockSpec((tn, num_experts), lambda i: (i, 0)),  # masked (unpadded)
                pl.BlockSpec((1, 1, ep), lambda i: (i, 0, 0)),      # partial col sums
            ],
        ),
        compiler_params=cparams,
    )(x, wg, bg)

    # ---- global denominator -> precomputed reciprocal scale (tiny, plain JAX) ----
    denom = jnp.sum(partials[..., :num_experts], axis=0) + epsilon   # (1, E)
    scale = (capacity / denom).astype(f32)                           # (1, E)

    # -------- pass 2: broadcast multiply, emitted directly in delivered shape --------
    gate = pl.pallas_call(
        _gate_scale_kernel,
        out_shape=jax.ShapeDtypeStruct((n, num_experts), f32),
        grid_spec=pltpu.PrefetchScalarGridSpec(
            num_scalar_prefetch=0,
            grid=(nt,),
            in_specs=[
                pl.BlockSpec((tn, num_experts), lambda i: (i, 0)),   # masked tile
                pl.BlockSpec((1, num_experts), lambda i: (0, 0)),    # scale
            ],
            out_specs=pl.BlockSpec((tn, num_experts), lambda i: (i, 0)),
        ),
        compiler_params=pltpu.CompilerParams(
            dimension_semantics=("parallel",)),
    )(masked, scale)

    loss = None
    if use_aux_loss:
        # Matches the given module exactly:
        #   load = gate.sum(0); importance = gate.mean(0)
        #   loss = num_experts * (load * importance).sum()
        # Tiny scalar reductions -> plain JAX on the kernel output.
        load = gate.sum(axis=0)
        importance = gate.mean(axis=0)
        loss = num_experts * jnp.sum(load * importance)
    return gate, loss


if __name__ == "__main__":
    key = jax.random.PRNGKey(0)
    # N deliberately NOT a multiple of the token tile to exercise row masking
    # and the multi-tile partial-sum reduction (nt == 2 here).
    N, dim, num_experts = 200, 128, 8

    ks = jax.random.split(key, 3)
    wg = jax.random.normal(ks[0], (dim, num_experts), jnp.float32) * 0.1
    bg = jax.random.normal(ks[1], (num_experts,), jnp.float32) * 0.1
    x = jax.random.normal(ks[2], (N, dim), jnp.float32)

    gate, loss = switch_gate_forward(x, wg, bg, capacity_factor=1.0,
                                     epsilon=1e-6)
    gate = jax.block_until_ready(gate)

    # pure-JAX reference (mirrors SwitchGate.forward exactly)
    def ref_forward(x):
        gs = jax.nn.softmax(x @ wg + bg[None, :], axis=-1)
        idx = jnp.argmax(gs, axis=-1)
        mask = jax.nn.one_hot(idx, num_experts, dtype=gs.dtype)
        masked = gs * mask
        denom = masked.sum(0, keepdims=True) + 1e-6
        return masked / denom * float(int(1.0 * N))

    ref = ref_forward(x)
    err = float(jnp.max(jnp.abs(gate - ref)))
    assert jnp.allclose(gate, ref, atol=2e-3, rtol=2e-3), f"max abs err {err}"
    assert gate.shape == (N, num_experts)
    assert loss is None
    print("KERNEL_OK")
</pallas_src>

<mosaic_0001>
module attributes {stable_mosaic.version = 11 : i64} {
  func.func @_gate_partial_kernel(%arg0: i32, %arg1: memref<104x128xf32, #tpu.memory_space<vmem>>, %arg2: memref<128x128xf32, #tpu.memory_space<vmem>>, %arg3: memref<1x128xf32, #tpu.memory_space<vmem>>, %arg4: memref<104x8xf32, #tpu.memory_space<vmem>>, %arg5: memref<1x1x128xf32, #tpu.memory_space<vmem>>) attributes {dimension_semantics = [#tpu.dimension_semantics<parallel>], iteration_bounds = array<i64: 2>, scalar_prefetch = 0 : i64, scratch_operands = 0 : i64, tpu.core_type = #tpu.core_type<tc>, window_params = [{transform_indices = @transform_0, window_bounds = array<i64: 104, 128>}, {pipeline_mode = #tpu.pipeline_mode<synchronous>, transform_indices = @transform_1, window_bounds = array<i64: 128, 128>}, {pipeline_mode = #tpu.pipeline_mode<synchronous>, transform_indices = @transform_2, window_bounds = array<i64: 1, 128>}, {transform_indices = @transform_3, window_bounds = array<i64: 104, 8>}, {transform_indices = @transform_4, window_bounds = array<i64: 1, 1, 128>}]} {
    %c0 = arith.constant 0 : index
    %c0_0 = arith.constant 0 : index
    %0 = vector.load %arg1[%c0, %c0_0] : memref<104x128xf32, #tpu.memory_space<vmem>>, vector<104x128xf32>
    %c0_1 = arith.constant 0 : index
    %c0_2 = arith.constant 0 : index
    %1 = vector.load %arg2[%c0_1, %c0_2] : memref<128x128xf32, #tpu.memory_space<vmem>>, vector<128x128xf32>
    %cst = arith.constant dense<0.000000e+00> : vector<104x128xf32>
    %2 = tpu.matmul %0, %1, %cst {dimension_numbers = #tpu.dot_dimension_numbers<[1], [0], [0], [1], [0, 0, 1, 1], [], []>} : vector<104x128xf32>, vector<128x128xf32>, vector<104x128xf32> -> vector<104x128xf32>
    %c0_3 = arith.constant 0 : index
    %c0_4 = arith.constant 0 : index
    %3 = vector.load %arg3[%c0_3, %c0_4] : memref<1x128xf32, #tpu.memory_space<vmem>>, vector<1x128xf32>
    %4 = vector.broadcast %3 : vector<1x128xf32> to vector<104x128xf32>
    %5 = arith.addf %2, %4 : vector<104x128xf32>
    %cst_5 = arith.constant dense<0xFF800000> : vector<104xf32>
    %6 = vector.multi_reduction <maximumf>, %5, %cst_5 [1] : vector<104x128xf32> to vector<104xf32>
    %7 = vector.shape_cast %6 : vector<104xf32> to vector<104x1xf32>
    %8 = vector.broadcast %7 : vector<104x1xf32> to vector<104x128xf32>
    %9 = arith.subf %5, %8 : vector<104x128xf32>
    %10 = math.exp %9 : vector<104x128xf32>
    %cst_6 = arith.constant dense<0.000000e+00> : vector<104xf32>
    %11 = vector.multi_reduction <add>, %10, %cst_6 [1] : vector<104x128xf32> to vector<104xf32>
    %12 = vector.shape_cast %11 : vector<104xf32> to vector<104x1xf32>
    %13 = tpu.reciprocal %12 : vector<104x1xf32> -> vector<104x1xf32>
    %14 = tpu.reduce_index %5 {axis = 1 : i32, kind = #tpu.reduction_kind<arg_max>} : vector<104x128xf32> -> vector<104xi32>
    %15 = vector.shape_cast %14 : vector<104xi32> to vector<104x1xi32>
    %16 = tpu.iota {dimensions = array<i32: 1>} : vector<104x128xi32>
    %17 = tpu.iota {dimensions = array<i32: 0>} : vector<104x128xi32>
    %c104_i32 = arith.constant 104 : i32
    %18 = arith.muli %arg0, %c104_i32 : i32
    %19 = vector.broadcast %18 : i32 to vector<104x128xi32>
    %20 = arith.addi %17, %19 : vector<104x128xi32>
    %21 = vector.broadcast %15 : vector<104x1xi32> to vector<104x128xi32>
    %22 = arith.cmpi eq, %16, %21 : vector<104x128xi32>
    %c200_i32 = arith.constant 200 : i32
    %23 = vector.broadcast %c200_i32 : i32 to vector<104x128xi32>
    %24 = arith.cmpi slt, %20, %23 : vector<104x128xi32>
    %25 = arith.andi %22, %24 : vector<104x128xi1>
    %cst_7 = arith.constant 0.000000e+00 : f32
    %26 = vector.shape_cast %13 : vector<104x1xf32> to vector<104x1xf32>
    %27 = vector.broadcast %26 : vector<104x1xf32> to vector<104x128xf32>
    %28 = vector.broadcast %cst_7 : f32 to vector<104x128xf32>
    %29 = arith.select %25, %27, %28 : vector<104x128xi1>, vector<104x128xf32>
    %cst_8 = arith.constant dense<0.000000e+00> : vector<128xf32>
    %30 = vector.multi_reduction <add>, %29, %cst_8 [0] : vector<104x128xf32> to vector<128xf32>
    %31 = vector.shape_cast %30 : vector<128xf32> to vector<1x128xf32>
    %32 = vector.shape_cast %31 : vector<1x128xf32> to vector<1x1x128xf32>
    %c0_9 = arith.constant 0 : index
    %c0_10 = arith.constant 0 : index
    %c0_11 = arith.constant 0 : index
    %33 = vector.load %arg5[%c0_9, %c0_10, %c0_11] : memref<1x1x128xf32, #tpu.memory_space<vmem>>, vector<1x1x128xf32>
    tpu.vector_store %arg5[%c0_9, %c0_10, %c0_11], %32 {strides = array<i32>} : memref<1x1x128xf32, #tpu.memory_space<vmem>>, vector<1x1x128xf32>,
    %34 = vector.extract_strided_slice %29 {offsets = [0, 0], sizes = [104, 8], strides = [1, 1]} : vector<104x128xf32> to vector<104x8xf32>
    %c0_12 = arith.constant 0 : index
    %c0_13 = arith.constant 0 : index
    %35 = vector.load %arg4[%c0_12, %c0_13] : memref<104x8xf32, #tpu.memory_space<vmem>>, vector<104x8xf32>
    tpu.vector_store %arg4[%c0_12, %c0_13], %34 {strides = array<i32>} : memref<104x8xf32, #tpu.memory_space<vmem>>, vector<104x8xf32>,
    return
  }
  func.func @transform_0(%arg0: i32) -> (i32, i32) {
    %c0_i32 = arith.constant 0 : i32
    %c0_i32_0 = arith.constant 0 : i32
    return %arg0, %c0_i32 : i32, i32
  }
  func.func @transform_1(%arg0: i32) -> (i32, i32) {
    %c0_i32 = arith.constant 0 : i32
    %c0_i32_0 = arith.constant 0 : i32
    %c0_i32_1 = arith.constant 0 : i32
    return %c0_i32, %c0_i32_0 : i32, i32
  }
  func.func @transform_2(%arg0: i32) -> (i32, i32) {
    %c0_i32 = arith.constant 0 : i32
    %c0_i32_0 = arith.constant 0 : i32
    %c0_i32_1 = arith.constant 0 : i32
    return %c0_i32, %c0_i32_0 : i32, i32
  }
  func.func @transform_3(%arg0: i32) -> (i32, i32) {
    %c0_i32 = arith.constant 0 : i32
    %c0_i32_0 = arith.constant 0 : i32
    return %arg0, %c0_i32 : i32, i32
  }
  func.func @transform_4(%arg0: i32) -> (i32, i32, i32) {
    %c0_i32 = arith.constant 0 : i32
    %c0_i32_0 = arith.constant 0 : i32
    %c0_i32_1 = arith.constant 0 : i32
    return %arg0, %c0_i32, %c0_i32_0 : i32, i32, i32
  }
}

</mosaic_0001>

<bundles_post_ra>
// kernel: tpu_custom_call.1
= control target key start
LH: loop header
LB: loop body
LE: loop exit
PB: predicated region body
PF: predicated region fallthrough
CT: control target
= control target key end

     0   :  { %s2280_s0 = inlined_call_operand.hbm [shape: f32[200,128], index: 0, kind: input, shape index: {}]   ;;  %s2281_s1 = inlined_call_operand.hbm [shape: f32[128,128], index: 1, kind: input, shape index: {}]   ;;  %s2282_s2 = inlined_call_operand.vmem [shape: f32[1,128], index: 2, kind: input, shape index: {}]   ;;  %s2283_s3 = inlined_call_operand.vmem [shape: f32[200,8], index: 3, kind: output, shape index: {0}]   ;;  %s2284_s4 = inlined_call_operand.hbm [shape: f32[2,1,128], index: 4, kind: output, shape index: {1}]  }
   0x1   :  { %2287 = sst [smem:[#allocation12_spill]] %s2281_s1 }
   0x2   :  { %10 = vsyncpa [#allocation3], 0 }
   0x3   :  { %12 = vsyncpa [#allocation3 + $0x1], 0 }
   0x4   :  { %13 = vsyncpa [#allocation6], 0 }
   0x5   :  { %14 = vsyncpa [#allocation4], 0 }
   0x6   :  { %16 = vsyncpa [#allocation4 + $0x1], 0  ;;  %s1584_s15 = smov 0   ;;  %s1586_s16 = smov 0  }
   0x7   :  { %s1588_s17 = smov 0   ;;  %s1590_s18 = smov 0  }
   0x8 LB: > { %s1605_s19 = sadd.s32 4294967295, %s1519_s18   ;;  %s1094_s20 = sadd.s32 4294967294, %s1519_s18   ;;  %s1519_s18 = sphi %s1590_s18, %s2325_s18   ;;  %s1515_s17 = sphi %s1588_s17, %s2324_s17   ;;  %s1511_s16 = sphi %s1586_s16, %s2323_s16   ;;  %s1507_s15 = sphi %s1584_s15, %s2322_s15  }
   0x9   : > { %s1609_s21 = sadd.s32 1, %s1519_s18   ;;  %s29_s22 = sadd.s32 1, %s1515_s17 }
   0xa   : > { %s26_s23 = ssub.s32 %s1519_s18, %s1609_s21  ;;  %p36_p0 = scmp.ne.s32.totalorder %s1515_s17, %s1511_s16 }
   0xb   : > { %p27_p1 = scmp.eq.s32.totalorder %s26_s23, 0  ;;  %p37_p2 = scmp.eq.s32.totalorder %s1519_s18, 0 }
   0xc   : > { %p42_p3 = scmp.ne.s32.totalorder %s1511_s16, %s1507_s15  ;;  %p2286_p4 = scmp.eq.s32.totalorder %s1605_s19, 0 }
   0xd   : > { %s1621_s24 = scalar_select %p27_p1, %s1515_s17, %s29_s22  }
   0xe   : > { %p1623_p5 = por %p37_p2, %p36_p0  ;;  %p1629_p6 = por %p2286_p4, %p42_p3 }
   0xf   : > { %p108_p7 = scmp.eq.s32.totalorder %s1605_s19, 1  ;;  %p140_p8 = scmp.eq.s32.totalorder %s1094_s20, 1 }
  0x10   : > { %p1095_p9 = scmp.ge.s32.totalorder %s1519_s18, 1  ;;  %p147_p10 = scmp.lt.s32.totalorder %s1519_s18, 3 }
  0x11   : > { %p1636_p11 = por %p108_p7, %p36_p0  ;;  %p1640_p12 = por %p140_p8, %p42_p3 }
  0x12   : > { %p1644_p13 = pnand %p1095_p9, %p147_p10  ;;  %s2293_s1 = sld [smem:[#allocation12_spill]] }
  0x13   : > { %s2291_s28 = scalar_select %p1640_p12, 1, 0 }
  0x14   : > { %p1176_p1 = pneg %p1644_p13  ;;  %s1553_s7 = smov [#allocation5]  }
  0x15   : > { %s160_s8 = sshll.u32 %s1553_s7, 4  ;;  %s1554_s9 = smov 128   ;;  %s161_s8 = int_to_ptr.vmem [resolvable:$true] %s160_s8 }
  0x16   : > { %p1177_p0 = pnand %p1176_p1, %p2286_p4  ;;  %s1555_s10 = smov 8  }
  0x17   : > { %p2285_p2 = scmp.ge.s32.totalorder %s1519_s18, 2 }
  0x18   : > { %s158_s6 = sshll.u32 %s2293_s1, 4  ;;  %s159_s6 = int_to_ptr.hbm [resolvable:$true] %s158_s6 }
  0x19   : > { %1179 = dma.hbm_to_vmem [thread:$0]  (!%p1177_p0), %s159_s6, 2048, %s161_s8, [#allocation6], %s1554_s9, %s1554_s9, %s1555_s10  }
  0x1a   : > { %173 = sbr.rel (%p2285_p2) target bundleno = 69 (0x45), region = 24 }
  0x1f   : > { %176 = sbr.rel (!%p1623_p5) target bundleno = 69 (0x45), region = 28  ;;  %s177_s11 = sand.u32 (%p1623_p5), 1, %s1515_s17  }
  0x20   : > { %s182_s12 = smul.u32 (%p1623_p5), 13, %s1519_s18  ;;  %s1665_s30 = scalar_lea.sflag (%p1623_p5), [#allocation3], %s177_s11 }
  0x21   : > { %s1167_s13 = smul.u32 (%p1623_p5), 104, %s177_s11 }
  0x22   : > { %s183_s14 = ssub.s32 (%p1623_p5), 25, %s182_s12 }
  0x23   : > { %p184_p3 = scmp.lt.s32.totalorder (%p1623_p5), %s183_s14, 13  ;;  %s181_s5 = scalar_lea.vmem (%p1623_p5), [#allocation2], %s1167_s13 }
  0x25   : > { %s2327_s14 = smov (!%p184_p3, %s183_s14), 13 }
  0x26   : > { %s1098_s20 = sshll.u32 %s2327_s14, 3 }
  0x27   : > { %s187_s22 = ssub.s32 104, %s1098_s20 }
  0x28   : > { %s188_s23 = sshll.u32 %s187_s22, 4 }
  0x29   : > { %189 = vsyncadd %s1665_s30, %s188_s23  ;;  %p1668_p5 = scmp.ne.s32.totalorder %s1098_s20, 0  ;;  %s1117_s6 = smul.u32 104, %s1519_s18 }
  0x2a   : > { %s1673_s7 = sshll.u32 %s181_s5, 4  ;;  %s1102_s8 = sshll.u32 %s2327_s14, 7  ;;  %s197_s7 = int_to_ptr.vmem [resolvable:$true] %s1673_s7 }
  0x2b   : > { %s192_s11 = scalar_lea.hbm %s2280_s0, %s1117_s6  ;;  %s1380_s20 = sshrl.u32 %s1102_s8, 4 }
  0x2c   : > { %s194_s12 = sshll.u32 %s192_s11, 4  ;;  %s1389_s1 = scalar_lea.hbm %s2280_s0, 200  ;;  %s1680_s12 = int_to_ptr.hbm [resolvable:$true] %s194_s12 }
  0x2d   : > { %s1378_s13 = sshra.s32 %s1680_s12, 4  ;;  %s1379_s13 = int_to_ptr.hbm [resolvable:$true] %s1378_s13 }
  0x2e   : > { %s1385_s22 = scalar_lea.hbm %s1379_s13, %s1380_s20  ;;  %p1390_p10 = scmp.lt.s32.totalorder %s1379_s13, %s2280_s0 }
  0x2f   : > { %p1386_p7 = scmp.ne.s32.totalorder %s1379_s13, %s1385_s22  ;;  %p1391_p1 = scmp.lt.s32.totalorder %s1389_s1, %s1385_s22 }
  0x31   : > { %p1387_p8 = pnand %p1386_p7, %p1668_p5  ;;  %p1392_p0 = por %p1391_p1, %p1390_p10 }
  0x33   : > { %p1388_p9 = pneg %p1387_p8 }
  0x35   : > { %p1393_p3 = pnand %p1392_p0, %p1388_p9 }
  0x37   : > { %1396 = shalt.err (!%p1393_p3)
}
  0x38   : > { %s1397_s10 = sshra.s32 %s197_s7, 4  ;;  %s1556_s23 = smov [#allocation2]   ;;  %s1398_s10 = int_to_ptr.vmem [resolvable:$true] %s1397_s10 }
  0x39   : > { %s1404_s11 = scalar_lea.vmem %s1398_s10, %s1380_s20  ;;  %s1408_s5 = scalar_lea.vmem %s1556_s23, 208 }
  0x3a   : > { %p1405_p7 = scmp.ne.s32.totalorder %s1398_s10, %s1404_s11  ;;  %p1410_p4 = scmp.lt.s32.totalorder %s1408_s5, %s1404_s11 }
  0x3c   : > { %p1406_p8 = pnand %p1405_p7, %p1668_p5 }
  0x3e   : > { %p1407_p2 = pneg %p1406_p8 }
  0x40   : > { %p1412_p12 = pnand %p1410_p4, %p1407_p2 }
  0x42   : > { %1415 = shalt.err (!%p1412_p12)
}
  0x43   : > { %s1557_s13 = smov 128   ;;  %s1558_s1 = smov 8  }
  0x44   : > { %202 = dma.hbm_to_vmem [thread:$0]  (%p1668_p5), %s1680_s12, %s1102_s8, %s197_s7, %s1665_s30, %s1557_s13, %s1557_s13, %s1558_s1  }
  0x45 PF: > { %208 = sbr.rel (%p1644_p13) target bundleno = 654 (0x28e), region = 32  ;;  %s1708_s20 = sand.u32 (!%p1644_p13), 1, %s1511_s16  }
  0x46   : > { %s1168_s22 = smul.u32 (!%p1644_p13), 104, %s1708_s20  ;;  %s211_s9 = scalar_lea.sflag (!%p1644_p13), [#allocation3], %s1708_s20 }
  0x48   : > { %s1714_s6 = scalar_lea.vmem (!%p1644_p13), [#allocation2], %s1168_s22 }
  0x4a   : > { %1494 = dma.done.wait (%p1629_p6), %s211_s9, 1664  }
  0x4b   : > { %1496 = vsyncadd (%p1629_p6), %s211_s9, 4294965632  ;;  %p2295_p4 = scmp.eq.s32.totalorder %s1605_s19, 0 }
  0x4d   : > { %1498 = dma.done.wait (%p2295_p4), [#allocation6], 2048   ;;  %p2296_p12 = pmov %p2295_p4 }
  0x4e   : > { %v286_v0 = vld [vmem:[#allocation5 + $0x78] sm:$0xff]  ;;  %v285_v1 = vld [vmem:[#allocation5 + $0x70] sm:$0xff]  ;;  %v284_v2 = vld [vmem:[#allocation5 + $0x68] sm:$0xff]  ;;  %s662_s14 = smul.u32 104, %s1605_s19  ;;  %vm748_vm13 = vcmask 64512   ;;  %s1894_s30 = scalar_lea.vmem [#allocation7], %s1168_s22  }
  0x4f   : > { %1500 = vsyncadd (%p2296_p12), [#allocation6], 4294965248  ;;  %291 = vmatpush.msra.mxu0 %v286_v0  ;;  %1119 = vmatpush.msra.mxu1 %v286_v0  ;;  %v283_v3 = vld [vmem:[#allocation5 + $0x60] sm:$0xff]  ;;  %v282_v4 = vld [vmem:[#allocation5 + $0x58] sm:$0xff]  ;;  %s247_s25 = scalar_lea.vmem [#allocation8], %s1708_s20  ;;  %s773_s8 = smul.u32 (%p1636_p11), 13, %s1605_s19 }
  0x50   : > { %1120 = vmatpush.msra.mxu2 %v286_v0  ;;  %1121 = vmatpush.msra.mxu3 %v286_v0  ;;  %v281_v5 = vld [vmem:[#allocation5 + $0x50] sm:$0xff]  ;;  %v280_v6 = vld [vmem:[#allocation5 + $0x48] sm:$0xff]  ;;  %v279_v7 = vld [vmem:[#allocation5 + $0x40] sm:$0xff]  ;;  %s2168_s11 = scalar_lea.vmem (%p1636_p11), %s2283_s3, %s662_s14  }
  0x51   : > { %292 = vmatpush.msra.mxu0 %v285_v1  ;;  %1122 = vmatpush.msra.mxu1 %v285_v1  ;;  %v278_v8 = vld [vmem:[#allocation5 + $0x38] sm:$0xff]  ;;  %v277_v9 = vld [vmem:[#allocation5 + $0x30] sm:$0xff]  ;;  %v276_v10 = vld [vmem:[#allocation5 + $0x28] sm:$0xff]  ;;  %s774_s23 = ssub.s32 (%p1636_p11), 25, %s773_s8 }
  0x52   : > { %1123 = vmatpush.msra.mxu2 %v285_v1  ;;  %1124 = vmatpush.msra.mxu3 %v285_v1  ;;  %v275_v11 = vld [vmem:[#allocation5 + $0x20] sm:$0xff]  ;;  %v274_v12 = vld [vmem:[#allocation5 + $0x18] sm:$0xff]  ;;  %v273_v13 = vld [vmem:[#allocation5 + $0x10] sm:$0xff]  ;;  %p775_p6 = scmp.lt.s32.totalorder (%p1636_p11), %s774_s23, 13 }
  0x53   : > { %293 = vmatpush.msra.mxu0 %v284_v2  ;;  %1125 = vmatpush.msra.mxu1 %v284_v2  ;;  %v272_v14 = vld [vmem:[#allocation5 + $0x8] sm:$0xff]  ;;  %v271_v15 = vld [vmem:[#allocation5] sm:$0xff]  ;;  %v258_v16 = vld [vmem:[%s1714_s6] sm:$0xff] }
  0x54   : > { %1126 = vmatpush.msra.mxu2 %v284_v2  ;;  %1127 = vmatpush.msra.mxu3 %v284_v2  ;;  %v260_v17 = vld [vmem:[%s1714_s6 + $0x10] sm:$0xff]  ;;  %v263_v18 = vld [vmem:[%s1714_s6 + $0x28] sm:$0xff]  ;;  %v261_v21 = vld [vmem:[%s1714_s6 + $0x18] sm:$0xff] }
  0x55   : > { %294 = vmatpush.msra.mxu0 %v283_v3  ;;  %1128 = vmatpush.msra.mxu1 %v283_v3  ;;  %v267_v19 = vld [vmem:[%s1714_s6 + $0x48] sm:$0xff]  ;;  %v264_v22 = vld [vmem:[%s1714_s6 + $0x30] sm:$0xff]  ;;  %v262_v24 = vld [vmem:[%s1714_s6 + $0x20] sm:$0xff] }
  0x56   : > { %1129 = vmatpush.msra.mxu2 %v283_v3  ;;  %1130 = vmatpush.msra.mxu3 %v283_v3  ;;  %v259_v20 = vld [vmem:[%s1714_s6 + $0x8] sm:$0xff]  ;;  %v268_v23 = vld [vmem:[%s1714_s6 + $0x50] sm:$0xff]  ;;  %v265_v25 = vld [vmem:[%s1714_s6 + $0x38] sm:$0xff] }
  0x57   : > { %295 = vmatpush.msra.mxu0 %v282_v4  ;;  %1131 = vmatpush.msra.mxu1 %v282_v4  ;;  %v269_v26 = vld [vmem:[%s1714_s6 + $0x58] sm:$0xff]  ;;  %v266_v27 = vld [vmem:[%s1714_s6 + $0x40] sm:$0xff] }
  0x58   : > { %1132 = vmatpush.msra.mxu2 %v282_v4  ;;  %1133 = vmatpush.msra.mxu3 %v282_v4  ;;  %v270_v28 = vld [vmem:[%s1714_s6 + $0x60] sm:$0xff] }
  0x59   : > { %296 = vmatpush.msra.mxu0 %v281_v5  ;;  %1134 = vmatpush.msra.mxu1 %v281_v5  ;;  %v1289_v29 = vld [vmem:[%s2282_s2] ss:$0 sm:$0xff] }
  0x5a   : > { %1135 = vmatpush.msra.mxu2 %v281_v5  ;;  %1136 = vmatpush.msra.mxu3 %v281_v5 }
  0x5b   : > { %297 = vmatpush.msra.mxu0 %v280_v6  ;;  %1137 = vmatpush.msra.mxu1 %v280_v6 }
  0x5c   : > { %1138 = vmatpush.msra.mxu2 %v280_v6  ;;  %1139 = vmatpush.msra.mxu3 %v280_v6 }
  0x5d   : > { %298 = vmatpush.msra.mxu0 %v279_v7  ;;  %1140 = vmatpush.msra.mxu1 %v279_v7 }
  0x5e   : > { %1141 = vmatpush.msra.mxu2 %v279_v7  ;;  %1142 = vmatpush.msra.mxu3 %v279_v7 }
  0x5f   : > { %299 = vmatpush.msra.mxu0 %v278_v8  ;;  %1143 = vmatpush.msra.mxu1 %v278_v8 }
  0x60   : > { %1144 = vmatpush.msra.mxu2 %v278_v8  ;;  %1145 = vmatpush.msra.mxu3 %v278_v8 }
  0x61   : > { %300 = vmatpush.msra.mxu0 %v277_v9  ;;  %1146 = vmatpush.msra.mxu1 %v277_v9 }
  0x62   : > { %1147 = vmatpush.msra.mxu2 %v277_v9  ;;  %1148 = vmatpush.msra.mxu3 %v277_v9 }
  0x63   : > { %301 = vmatpush.msra.mxu0 %v276_v10  ;;  %1149 = vmatpush.msra.mxu1 %v276_v10 }
  0x64   : > { %1150 = vmatpush.msra.mxu2 %v276_v10  ;;  %1151 = vmatpush.msra.mxu3 %v276_v10 }
  0x65   : > { %302 = vmatpush.msra.mxu0 %v275_v11  ;;  %1152 = vmatpush.msra.mxu1 %v275_v11 }
  0x66   : > { %1153 = vmatpush.msra.mxu2 %v275_v11  ;;  %1154 = vmatpush.msra.mxu3 %v275_v11 }
  0x67   : > { %303 = vmatpush.msra.mxu0 %v274_v12  ;;  %1155 = vmatpush.msra.mxu1 %v274_v12 }
  0x68   : > { %1156 = vmatpush.msra.mxu2 %v274_v12  ;;  %1157 = vmatpush.msra.mxu3 %v274_v12 }
  0x69   : > { %304 = vmatpush.msra.mxu0 %v273_v13  ;;  %1158 = vmatpush.msra.mxu1 %v273_v13 }
  0x6a   : > { %1159 = vmatpush.msra.mxu2 %v273_v13  ;;  %1160 = vmatpush.msra.mxu3 %v273_v13 }
  0x6b   : > { %305 = vmatpush.msra.mxu0 %v272_v14  ;;  %1161 = vmatpush.msra.mxu1 %v272_v14 }
  0x6c   : > { %1162 = vmatpush.msra.mxu2 %v272_v14  ;;  %1163 = vmatpush.msra.mxu3 %v272_v14 }
  0x6d   : > { %306 = vmatpush.msra.mxu0 %v271_v15  ;;  %1164 = vmatpush.msra.mxu1 %v271_v15 }
  0x6e   : > { %1165 = vmatpush.msra.mxu2 %v271_v15  ;;  %307 = vmatmul.f32.vlgmr.msra.gmra.mxu0 %v258_v16 }
  0x6f   : > { %313 = vmatmul.f32.vlgmr.msra.gmra.mxu1 %v260_v17  ;;  %322 = vmatmul.f32.vlgmr.msra.gmra.mxu2 %v263_v18 }
  0x70   : > { %1166 = vmatpush.msra.mxu3 %v271_v15 }
  0x71   : > { %334 = vmatmul.f32.vlgmr.msra.gmra.mxu3 %v267_v19 }
  0x76   : > { %310 = vmatmul.f32.gmra.mxu0 %v259_v20 }
  0x77   : > { %316 = vmatmul.f32.gmra.mxu1 %v261_v21  ;;  %325 = vmatmul.f32.gmra.mxu2 %v264_v22 }
  0x79   : > { %337 = vmatmul.f32.gmra.mxu3 %v268_v23 }
  0x7f   : > { %319 = vmatmul.f32.gmra.mxu1 %v262_v24  ;;  %328 = vmatmul.f32.gmra.mxu2 %v265_v25 }
  0x81   : > { %340 = vmatmul.f32.gmra.mxu3 %v269_v26 }
  0x87   : > { %331 = vmatmul.f32.gmra.mxu2 %v266_v27 }
  0x89   : > { %343 = vmatmul.f32.gmra.mxu3 %v270_v28 }
  0xeb   : > { %v308_v30 = vpop.f32.mrf.mxu0 }
  0xec   : > { %v309_v31 = vadd.f32 %v1289_v29, %v308_v30  ;;  %v314_v32 = vpop.f32.mrf.mxu1 }
  0xed   : > { %v315_v33 = vadd.f32 %v1289_v29, %v314_v32 }
  0xee   : > { %347 = vmax.xlane.f32.xlu0 %v309_v31 }
  0xef   : > { %351 = vmax.xlane.f32.xlu1 %v315_v33 }
  0xf2   : > { %v323_v34 = vpop.f32.mrf.mxu2 }
  0xf3   : > { %v1740_v35 = vadd.f32 %v1289_v29, %v323_v34  ;;  %v311_v36 = vpop.f32.mrf.mxu0 }
  0xf4   : > { %v312_v37 = vadd.f32 %v1289_v29, %v311_v36  ;;  %v317_v38 = vpop.f32.mrf.mxu1  ;;  %v335_v39 = vpop.f32.mrf.mxu3 }
  0xf5   : > { %v318_v40 = vadd.f32 %v1289_v29, %v317_v38  ;;  %357 = vmax.xlane.f32.xlu2 %v1740_v35  ;;  %v1751_v48 = vadd.f32 %v1289_v29, %v335_v39 }
  0xf6   : > { %349 = vmax.xlane.f32.xlu0 %v312_v37 }
  0xf7   : > { %353 = vmax.xlane.f32.xlu1 %v318_v40 }
  0xfa   : > { %v326_v41 = vpop.f32.mrf.mxu2 }
  0xfb   : > { %v1743_v42 = vadd.f32 %v1289_v29, %v326_v41 }
  0xfc   : > { %v320_v43 = vpop.f32.mrf.mxu1  ;;  %v338_v44 = vpop.f32.mrf.mxu3 }
  0xfd   : > { %v1745_v45 = vadd.f32 %v1289_v29, %v320_v43  ;;  %v1755_v50 = vadd.f32 %v1289_v29, %v338_v44 }
  0xfe   : > { %359 = vmax.xlane.f32.xlu0 %v1743_v42 }
  0xff   : > { %355 = vmax.xlane.f32.xlu2 %v1745_v45 }
 0x102   : > { %v329_v46 = vpop.f32.mrf.mxu2 }
 0x103   : > { %v1749_v47 = vadd.f32 %v1289_v29, %v329_v46 }
 0x104   : > { %v341_v49 = vpop.f32.mrf.mxu3 }
 0x105   : > { %361 = vmax.xlane.f32.xlu1 %v1749_v47  ;;  %v1764_v55 = vadd.f32 %v1289_v29, %v341_v49 }
 0x106   : > { %365 = vmax.xlane.f32.xlu0 %v1751_v48 }
 0x10a   : > { %v332_v51 = vpop.f32.mrf.mxu2 }
 0x10b   : > { %v1757_v52 = vadd.f32 %v1289_v29, %v332_v51 }
 0x10c   : > { %v344_v53 = vpop.f32.mrf.mxu3 }
 0x10d   : > { %v1759_v54 = vadd.f32 %v1289_v29, %v344_v53  ;;  %363 = vmax.xlane.f32.xlu2 %v1757_v52  ;;  %367 = vmax.xlane.f32.xlu1 %v1755_v50 }
 0x10f   : > { %371 = vmax.xlane.f32.xlu0 %v1759_v54 }
 0x115   : > { %369 = vmax.xlane.f32.xlu2 %v1764_v55  ;;  %620 = vmax.index.xlane.f32.xlu1 %v309_v31 }
 0x117   : > { %626 = vmax.index.xlane.f32.xlu0 %v318_v40 }
 0x11d   : > { %622 = vmax.index.xlane.f32.xlu2 %v312_v37  ;;  %624 = vmax.index.xlane.f32.xlu1 %v315_v33 }
 0x161   : > { %v348_v56 = vpop.xlane.xlu0 %347 }
 0x162   : > { %v352_v57 = vpop.xlane.xlu1 %351  ;;  %v373_v58 = vsub.f32 %v309_v31, %v348_v56 }
 0x163   : > { %v375_v59 = vsub.f32 %v315_v33, %v352_v57 }
 0x164   : > { %v386_v60 = vmul.f32 1.442695, %v373_v58 }
 0x165   : > { %v390_v61 = vmul.f32 1.442695, %v375_v59 }
 0x166   : > { %1290 = vpow2.f32 %v386_v60 }
 0x167   : > { %1292 = vpow2.f32 %v390_v61 }
 0x168   : > { %v358_v62 = vpop.xlane.xlu2 %357 }
 0x169   : > { %v378_v63 = vsub.f32 %v1740_v35, %v358_v62  ;;  %v350_v0 = vpop.xlane.xlu0 %349 }
 0x16a   : > { %v354_v1 = vpop.xlane.xlu1 %353  ;;  %v374_v2 = vsub.f32 %v312_v37, %v350_v0 }
 0x16b   : > { %v396_v3 = vmul.f32 1.442695, %v378_v63  ;;  %v376_v4 = vsub.f32 %v318_v40, %v354_v1 }
 0x16c   : > { %v1291_v5 = vpop.eup %1290  ;;  %v388_v6 = vmul.f32 1.442695, %v374_v2 }
 0x16d   : > { %v1293_v7 = vpop.eup %1292  ;;  %1294 = vpow2.f32 %v396_v3  ;;  %v392_v8 = vmul.f32 1.442695, %v376_v4  ;;  %412 = vadd.xlane.f32.xlu1 %v1291_v5 }
 0x16e   : > { %1296 = vpow2.f32 %v388_v6  ;;  %416 = vadd.xlane.f32.xlu0 %v1293_v7 }
 0x16f   : > { %1298 = vpow2.f32 %v392_v8 }
 0x171   : > { %v360_v9 = vpop.xlane.xlu0 %359 }
 0x172   : > { %v379_v10 = vsub.f32 %v1743_v42, %v360_v9  ;;  %v356_v15 = vpop.xlane.xlu2 %355 }
 0x173   : > { %v1295_v11 = vpop.eup %1294  ;;  %v377_v29 = vsub.f32 %v1745_v45, %v356_v15 }
 0x174   : > { %v1297_v12 = vpop.eup %1296  ;;  %v398_v13 = vmul.f32 1.442695, %v379_v10 }
 0x175   : > { %v1299_v14 = vpop.eup %1298  ;;  %414 = vadd.xlane.f32.xlu2 %v1297_v12  ;;  %v394_v31 = vmul.f32 1.442695, %v377_v29 }
 0x176   : > { %1300 = vpow2.f32 %v398_v13  ;;  %422 = vadd.xlane.f32.xlu0 %v1295_v11  ;;  %418 = vadd.xlane.f32.xlu1 %v1299_v14 }
 0x178   : > { %v362_v16 = vpop.xlane.xlu1 %361 }
 0x179   : > { %v366_v17 = vpop.xlane.xlu0 %365  ;;  %v380_v39 = vsub.f32 %v1749_v47, %v362_v16 }
 0x17a   : > { %v382_v18 = vsub.f32 %v1751_v48, %v366_v17 }
 0x17b   : > { %v400_v41 = vmul.f32 1.442695, %v380_v39 }
 0x17c   : > { %v1301_v19 = vpop.eup %1300  ;;  %v404_v20 = vmul.f32 1.442695, %v382_v18 }
 0x17e   : > { %1302 = vpow2.f32 %v404_v20  ;;  %424 = vadd.xlane.f32.xlu1 %v1301_v19 }
 0x180   : > { %v364_v21 = vpop.xlane.xlu2 %363  ;;  %v368_v22 = vpop.xlane.xlu1 %367 }
 0x181   : > { %v381_v23 = vsub.f32 %v1757_v52, %v364_v21  ;;  %v383_v24 = vsub.f32 %v1755_v50, %v368_v22 }
 0x182   : > { %v372_v27 = vpop.xlane.xlu0 %371 }
 0x183   : > { %v402_v25 = vmul.f32 1.442695, %v381_v23  ;;  %v406_v26 = vmul.f32 1.442695, %v383_v24  ;;  %v385_v30 = vsub.f32 %v1759_v54, %v372_v27 }
 0x184   : > { %v1303_v28 = vpop.eup %1302 }
 0x185   : > { %1304 = vpow2.f32 %v402_v25  ;;  %430 = vadd.xlane.f32.xlu0 %v1303_v28  ;;  %v410_v34 = vmul.f32 1.442695, %v385_v30 }
 0x186   : > { %1306 = vpow2.f32 %v406_v26  ;;  %630 = vmax.index.xlane.f32.xlu1 %v1740_v35 }
 0x187   : > { %1308 = vpow2.f32 %v394_v31 }
 0x188   : > { %v370_v32 = vpop.xlane.xlu2 %369  ;;  %v1785_v46 = vpop.xlane.xlu1 %620 }
 0x189   : > { %v384_v33 = vsub.f32 %v1764_v55, %v370_v32 }
 0x18a   : > { %v1789_v51 = vpop.xlane.xlu0 %626 }
 0x18b   : > { %v1305_v36 = vpop.eup %1304  ;;  %v408_v37 = vmul.f32 1.442695, %v384_v33 }
 0x18c   : > { %v1307_v38 = vpop.eup %1306 }
 0x18d   : > { %1310 = vpow2.f32 %v408_v37  ;;  %432 = vadd.xlane.f32.xlu2 %v1307_v38  ;;  %428 = vadd.xlane.f32.xlu0 %v1305_v36  ;;  %v1309_v40 = vpop.eup %1308 }
 0x18e   : > { %1312 = vpow2.f32 %v410_v34 }
 0x18f   : > { %1314 = vpow2.f32 %v400_v41 }
 0x190   : > { %v1787_v49 = vpop.xlane.xlu1 %624 }
 0x193   : > { %v1311_v43 = vpop.eup %1310 }
 0x194   : > { %v1313_v44 = vpop.eup %1312  ;;  %434 = vadd.xlane.f32.xlu1 %v1311_v43 }
 0x195   : > { %420 = vadd.xlane.f32.xlu2 %v1309_v40  ;;  %436 = vadd.xlane.f32.xlu0 %v1313_v44  ;;  %v1315_v35 = vpop.eup %1314 }
 0x19c   : > { %636 = vmax.index.xlane.f32.xlu1 %v1757_v52 }
 0x19d   : > { %426 = vadd.xlane.f32.xlu2 %v1315_v35  ;;  %634 = vmax.index.xlane.f32.xlu0 %v1749_v47  ;;  %v646_v47 = vlaneseq }
 0x19f   : > { %v1791_v52 = vshrl.u32 %v646_v47, 7  ;;  %v1811_v59 = vand.u32 127, %v646_v47 }
 0x1a1   : > { %v654_v0 = vadd.s32 40, %v1791_v52  ;;  %vm677_vm2 = vcmp.eq.s32.totalorder %v1811_v59, %v1785_v46  ;;  %vm680_vm5 = vcmp.eq.s32.totalorder %v1811_v59, %v1789_v51  ;;  %vm679_vm8 = vcmp.eq.s32.totalorder %v1811_v59, %v1787_v49 }
 0x1a4   : > { %642 = vmax.index.xlane.f32.xlu1 %v1764_v55  ;;  %v650_v55 = vadd.s32 8, %v1791_v52 }
 0x1a5   : > { %628 = vmax.index.xlane.f32.xlu2 %v1745_v45  ;;  %640 = vmax.index.xlane.f32.xlu0 %v1755_v50  ;;  %v1794_v45 = vpop.xlane.xlu2 %622 }
 0x1ad   : > { %632 = vmax.index.xlane.f32.xlu2 %v1743_v42  ;;  %v651_v42 = vadd.s32 16, %v1791_v52 }
 0x1b5   : > { %638 = vmax.index.xlane.f32.xlu2 %v1751_v48  ;;  %v1802_v48 = vstv %s662_s14 }
 0x1b6   : > { %v664_v56 = vadd.s32 %v1802_v48, %v1791_v52  ;;  %v1809_v57 = vadd.s32 %v1802_v48, %v651_v42  ;;  %v1822_v1 = vadd.s32 %v1802_v48, %v650_v55  ;;  %v1838_v10 = vadd.s32 %v1802_v48, %v654_v0 }
 0x1b8   : > { %vm690_vm0 = vcmp.lt.s32.totalorder %v664_v56, 200  ;;  %vm692_vm1 = vcmp.lt.s32.totalorder %v1809_v57, 200  ;;  %vm691_vm6 = vcmp.lt.s32.totalorder %v1822_v1, 200  ;;  %vm695_vm15 = vcmp.lt.s32.totalorder %v1838_v10, 200 }
 0x1bd   : > { %644 = vmax.index.xlane.f32.xlu2 %v1759_v54  ;;  %v652_v54 = vadd.s32 24, %v1791_v52 }
 0x1bf   : > { %v1814_v60 = vadd.s32 %v1802_v48, %v652_v54 }
 0x1c1   : > { %vm693_vm3 = vcmp.lt.s32.totalorder %v1814_v60, 200 }
 0x1e0   : > { %v413_v50 = vpop.xlane.xlu1 %412 }
 0x1e1   : > { %1316 = vrcp.f32 %v413_v50  ;;  %v1796_v53 = vpop.xlane.xlu0 %416  ;;  %v447_v6 = vand.u32 2147483647, %v413_v50  ;;  %v449_v7 = vand.u32 2147483648, %v413_v50  ;;  %vm443_vm9 = vweird.f32 %v413_v50 }
 0x1e2   : > { %1318 = vrcp.f32 %v1796_v53  ;;  %v475_v12 = vand.u32 2147483647, %v1796_v53  ;;  %v477_v14 = vand.u32 2147483648, %v1796_v53  ;;  %vm471_vm12 = vweird.f32 %v1796_v53 }
 0x1e3   : > { %vm448_vm11 = vcmp.eq.f32.partialorder %v447_v6, 8.507059e+37  ;;  %v450_v16 = vor.u32 1.1754944e-38, %v449_v7  ;;  %v657_v7 = vadd.s32 64, %v1791_v52 }
 0x1e4   : > { %vm1857_vm7 = vcmp.eq.f32.partialorder %v475_v12, 8.507059e+37  ;;  %v478_v27 = vor.u32 1.1754944e-38, %v477_v14  ;;  %v653_v14 = vadd.s32 32, %v1791_v52 }
 0x1e5   : > { %v672_v10 = vadd.s32 %v1802_v48, %v657_v7 }
 0x1e7   : > { %v1317_v58 = vpop.eup %1316 }
 0x1e8   : > { %v1816_v61 = vpop.eup %1318  ;;  %v439_v62 = vmul.f32 %v1317_v58, %v413_v50  ;;  %v1818_v63 = vpop.xlane.xlu2 %414  ;;  %vm444_vm4 = vweird.f32 %v1317_v58 }
 0x1e9   : > { %v467_v2 = vmul.f32 %v1816_v61, %v1796_v53  ;;  %v1826_v3 = vpop.xlane.xlu1 %418  ;;  %1320 = vrcp.f32 %v1818_v63  ;;  %v1829_v4 = vpop.xlane.xlu0 %422  ;;  %vm445_vm10 = vmor %vm443_vm9, %vm444_vm4  ;;  %vm472_vm14 = vweird.f32 %v1816_v61  ;;  %v463_v24 = vand.u32 2147483648, %v1818_v63 }
 0x1ea   : > { %v440_v5 = vsub.f32 1.0, %v439_v62  ;;  %1322 = vrcp.f32 %v1826_v3  ;;  %vm703_vm4 = vmand %vm677_vm2, %vm690_vm0  ;;  %v489_v28 = vand.u32 2147483647, %v1826_v3  ;;  %vm457_vm9 = vweird.f32 %v1818_v63 }
 0x1eb   : > { %v468_v8 = vsub.f32 1.0, %v467_v2  ;;  %1324 = vrcp.f32 %v1829_v4  ;;  %v491_v32 = vand.u32 2147483648, %v1826_v3  ;;  %v461_v33 = vand.u32 2147483647, %v1818_v63  ;;  %vm705_vm2 = vmand %vm679_vm8, %vm692_vm1 }
 0x1ec   : > { %v441_v9 = vmul.f32 %v1317_v58, %v440_v5  ;;  %v464_v40 = vor.u32 1.1754944e-38, %v463_v24  ;;  %vm1906_vm1 = vmand %vm680_vm5, %vm693_vm3  ;;  %v519_v46 = vand.u32 2147483648, %v1829_v4  ;;  %v517_v51 = vand.u32 2147483647, %v1829_v4 }
 0x1ed   : > { %v469_v11 = vmul.f32 %v1816_v61, %v468_v8  ;;  %vm2303_vm3 = vcmp.eq.s32.totalorder %v1811_v59, %v1794_v45  ;;  %v492_v55 = vor.u32 1.1754944e-38, %v491_v32 }
 0x1ee   : > { %v442_v13 = vadd.f32 %v1317_v58, %v441_v9  ;;  %vm1927_vm5 = vmand %vm2303_vm3, %vm691_vm6  ;;  %vm490_vm6 = vcmp.eq.f32.partialorder %v489_v28, 8.507059e+37 }
 0x1ef   : > { %v1321_v15 = vpop.eup %1320  ;;  %v470_v19 = vadd.f32 %v1816_v61, %v469_v11  ;;  %v656_v11 = vadd.s32 56, %v1791_v52 }
 0x1f0   : > { %v1851_v17 = vpop.eup %1322  ;;  %v446_v18 = vsel %vm445_vm10, %v1317_v58, %v442_v13  ;;  %v453_v20 = vmul.f32 %v1321_v15, %v1818_v63  ;;  %vm1874_vm10 = vmor %vm471_vm12, %vm472_vm14  ;;  %vm458_vm0 = vweird.f32 %v1321_v15  ;;  %vm485_vm12 = vweird.f32 %v1826_v3 }
 0x1f1   : > { %v451_v21 = vsel %vm448_vm11, %v450_v16, %v446_v18  ;;  %v481_v23 = vmul.f32 %v1851_v17, %v1826_v3  ;;  %v1864_v25 = vpop.xlane.xlu1 %424  ;;  %v1325_v26 = vpop.eup %1324  ;;  %v474_v38 = vsel %vm1874_vm10, %v1816_v61, %v470_v19  ;;  %vm486_vm8 = vweird.f32 %v1851_v17 }
 0x1f2   : > { %v454_v29 = vsub.f32 1.0, %v453_v20  ;;  %v509_v34 = vmul.f32 %v1325_v26, %v1829_v4  ;;  %v1881_v37 = vsel %vm703_vm4, %v451_v21, 0.0  ;;  %v479_v43 = vsel %vm1857_vm7, %v478_v27, %v474_v38  ;;  %vm459_vm7 = vmor %vm457_vm9, %vm458_vm0 }
 0x1f3   : > { %v482_v31 = vsub.f32 1.0, %v481_v23  ;;  %749 = vst.msk [vmem:[%s1894_s30] sm:$0xff] %vm748_vm13, %v1881_v37  ;;  %v1912_v49 = vsel %vm705_vm2, %v479_v43, 0.0  ;;  %vm514_vm11 = vweird.f32 %v1325_v26  ;;  %vm462_vm14 = vcmp.eq.f32.partialorder %v461_v33, 8.507059e+37  ;;  %vm487_vm4 = vmor %vm485_vm12, %vm486_vm8 }
 0x1f4   : > { %v455_v36 = vmul.f32 %v1321_v15, %v454_v29  ;;  %v510_v41 = vsub.f32 1.0, %v509_v34  ;;  %751 = vst.msk [vmem:[%s1894_s30 + $0x10] sm:$0xff] %vm748_vm13, %v1912_v49  ;;  %1326 = vrcp.f32 %v1864_v25  ;;  %vm513_vm9 = vweird.f32 %v1829_v4 }
 0x1f5   : > { %v483_v39 = vmul.f32 %v1851_v17, %v482_v31  ;;  %vm515_vm10 = vmor %vm513_vm9, %vm514_vm11  ;;  %v520_v58 = vor.u32 1.1754944e-38, %v519_v46  ;;  %vm518_vm2 = vcmp.eq.f32.partialorder %v517_v51, 8.507059e+37  ;;  %v660_v20 = vadd.s32 88, %v1791_v52 }
 0x1f6   : > { %v456_v35 = vadd.f32 %v1321_v15, %v455_v36  ;;  %v511_v50 = vmul.f32 %v1325_v26, %v510_v41  ;;  %v659_v23 = vadd.s32 80, %v1791_v52  ;;  %v1994_v27 = vadd.s32 %v1802_v48, %v656_v11 }
 0x1f7   : > { %v484_v47 = vadd.f32 %v1851_v17, %v483_v39  ;;  %v1997_v29 = vadd.s32 %v1802_v48, %v653_v14  ;;  %v531_v30 = vand.u32 2147483647, %v1864_v25  ;;  %v533_v31 = vand.u32 2147483648, %v1864_v25 }
 0x1f8   : > { %v460_v42 = vsel %vm459_vm7, %v1321_v15, %v456_v35  ;;  %v1933_v54 = vpop.xlane.xlu0 %430  ;;  %v512_v57 = vadd.f32 %v1325_v26, %v511_v50  ;;  %v2005_v36 = vadd.s32 %v1802_v48, %v660_v20  ;;  %v2008_v38 = vadd.s32 %v1802_v48, %v659_v23 }
 0x1f9   : > { %v465_v56 = vsel %vm462_vm14, %v464_v40, %v460_v42  ;;  %v631_v45 = vpop.xlane.xlu1 %630  ;;  %v488_v60 = vsel %vm487_vm4, %v1851_v17, %v484_v47  ;;  %1328 = vrcp.f32 %v1933_v54  ;;  %vm694_vm12 = vcmp.lt.s32.totalorder %v1997_v29, 200 }
 0x1fa   : > { %vm682_vm0 = vcmp.eq.s32.totalorder %v1811_v59, %v631_v45  ;;  %v516_v61 = vsel %vm515_vm10, %v1325_v26, %v512_v57  ;;  %v493_v62 = vsel %vm490_vm6, %v492_v55, %v488_v60  ;;  %v717_v63 = vsel %vm1927_vm5, %v465_v56, 0.0  ;;  %v1956_v3 = vpop.eup %1326 }
 0x1fb   : > { %vm708_vm8 = vmand %vm682_vm0, %vm695_vm15  ;;  %v521_v0 = vsel %vm518_vm2, %v520_v58, %v516_v61  ;;  %750 = vst.msk [vmem:[%s1894_s30 + $0x8] sm:$0xff] %vm748_vm13, %v717_v63  ;;  %v1949_v1 = vsel %vm1906_vm1, %v493_v62, 0.0  ;;  %v523_v6 = vmul.f32 %v1956_v3, %v1864_v25  ;;  %v729_v19 = vadd.f32 %v717_v63, %v1881_v37 }
 0x1fc   : > { %v1951_v2 = vsel %vm708_vm8, %v521_v0, 0.0  ;;  %752 = vst.msk [vmem:[%s1894_s30 + $0x18] sm:$0xff] %vm748_vm13, %v1949_v1  ;;  %vm698_vm15 = vcmp.lt.s32.totalorder %v672_v10, 200  ;;  %vm528_vm5 = vweird.f32 %v1956_v3  ;;  %vm527_vm14 = vweird.f32 %v1864_v25 }
 0x1fd   : > { %754 = vst.msk [vmem:[%s1894_s30 + $0x28] sm:$0xff] %vm748_vm13, %v1951_v2  ;;  %v524_v8 = vsub.f32 1.0, %v523_v6  ;;  %v2002_v34 = vadd.f32 %v729_v19, %v1912_v49  ;;  %vm701_vm6 = vcmp.lt.s32.totalorder %v2005_v36, 200  ;;  %v658_v55 = vadd.s32 72, %v1791_v52 }
 0x1fe   : > { %v575_v25 = vand.u32 2147483648, %v1933_v54 }
 0x1ff   : > { %v1968_v9 = vpop.eup %1328  ;;  %v525_v21 = vmul.f32 %v1956_v3, %v524_v8 }
 0x200   : > { %v1962_v4 = vpop.xlane.xlu2 %432  ;;  %v429_v5 = vpop.xlane.xlu0 %428  ;;  %v1991_v24 = vmul.f32 %v1968_v9, %v1933_v54 }
 0x201   : > { %1330 = vrcp.f32 %v1962_v4  ;;  %v559_v26 = vand.u32 2147483647, %v429_v5  ;;  %v561_v33 = vand.u32 2147483648, %v429_v5  ;;  %v2011_v39 = vadd.f32 %v1956_v3, %v525_v21 }
 0x202   : > { %1332 = vrcp.f32 %v429_v5  ;;  %v566_v41 = vsub.f32 1.0, %v1991_v24  ;;  %vm583_vm7 = vweird.f32 %v1962_v4  ;;  %vm555_vm11 = vweird.f32 %v429_v5 }
 0x203   : > { %vm2015_vm3 = vcmp.eq.f32.partialorder %v559_v26, 8.507059e+37  ;;  %v587_v47 = vand.u32 2147483647, %v1962_v4  ;;  %v589_v50 = vand.u32 2147483648, %v1962_v4  ;;  %v562_v56 = vor.u32 1.1754944e-38, %v561_v33 }
 0x204   : > { %v567_v36 = vmul.f32 %v1968_v9, %v566_v41 }
 0x205   : > { %v590_v43 = vor.u32 1.1754944e-38, %v589_v50 }
 0x207   : > { %v1972_v12 = vpop.eup %1330  ;;  %v1974_v13 = vpop.xlane.xlu1 %434 }
 0x208   : > { %v1333_v15 = vpop.eup %1332  ;;  %v579_v16 = vmul.f32 %v1972_v12, %v1962_v4  ;;  %v1979_v17 = vpop.xlane.xlu2 %420  ;;  %1334 = vrcp.f32 %v1974_v13  ;;  %v601_v60 = vand.u32 2147483647, %v1974_v13  ;;  %v603_v63 = vand.u32 2147483648, %v1974_v13 }
 0x209   : > { %v1982_v18 = vpop.xlane.xlu0 %436  ;;  %v551_v22 = vmul.f32 %v1333_v15, %v429_v5  ;;  %1336 = vrcp.f32 %v1979_v17  ;;  %vm556_vm1 = vweird.f32 %v1333_v15  ;;  %v503_v58 = vand.u32 2147483647, %v1979_v17 }
 0x20a   : > { %v580_v32 = vsub.f32 1.0, %v579_v16  ;;  %vm2030_vm4 = vmor %vm555_vm11, %vm556_vm1  ;;  %vm584_vm0 = vweird.f32 %v1972_v12  ;;  %v505_v6 = vand.u32 2147483648, %v1979_v17  ;;  %vm700_vm11 = vcmp.lt.s32.totalorder %v2008_v38, 200 }
 0x20b   : > { %v552_v28 = vsub.f32 1.0, %v551_v22  ;;  %vm2058_vm1 = vmor %vm583_vm7, %vm584_vm0  ;;  %vm602_vm7 = vcmp.eq.f32.partialorder %v601_v60, 8.507059e+37 }
 0x20c   : > { %v581_v51 = vmul.f32 %v1972_v12, %v580_v32  ;;  %v506_v20 = vor.u32 1.1754944e-38, %v505_v6 }
 0x20d   : > { %v553_v37 = vmul.f32 %v1333_v15, %v552_v28 }
 0x20e   : > { %v1335_v40 = vpop.eup %1334  ;;  %v582_v10 = vadd.f32 %v1972_v12, %v581_v51 }
 0x20f   : > { %v1337_v44 = vpop.eup %1336  ;;  %v593_v35 = vmul.f32 %v1335_v40, %v1974_v13  ;;  %v637_v46 = vpop.xlane.xlu1 %636  ;;  %v554_v49 = vadd.f32 %v1333_v15, %v553_v37  ;;  %vm598_vm2 = vweird.f32 %v1335_v40 }
 0x210   : > { %v495_v53 = vmul.f32 %v1337_v44, %v1979_v17  ;;  %v2027_v42 = vpop.xlane.xlu2 %426  ;;  %vm685_vm9 = vcmp.eq.s32.totalorder %v1811_v59, %v637_v46  ;;  %vm500_vm8 = vweird.f32 %v1337_v44 }
 0x211   : > { %v2035_v45 = vpop.xlane.xlu0 %634  ;;  %v594_v57 = vsub.f32 1.0, %v593_v35  ;;  %1338 = vrcp.f32 %v2027_v42  ;;  %vm711_vm10 = vmand %vm685_vm9, %vm698_vm15  ;;  %v558_v62 = vsel %vm2030_vm4, %v1333_v15, %v554_v49  ;;  %vm597_vm15 = vweird.f32 %v1974_v13 }
 0x212   : > { %v496_v61 = vsub.f32 1.0, %v495_v53  ;;  %v563_v5 = vsel %vm2015_vm3, %v562_v56, %v558_v62  ;;  %v655_v15 = vadd.s32 48, %v1791_v52  ;;  %vm499_vm3 = vweird.f32 %v1979_v17  ;;  %vm599_vm4 = vmor %vm597_vm15, %vm598_vm2 }
 0x213   : > { %v595_v0 = vmul.f32 %v1335_v40, %v594_v57  ;;  %v2049_v8 = vsel %vm711_vm10, %v563_v5, 0.0  ;;  %1340 = vrcp.f32 %v1982_v18  ;;  %v604_v13 = vor.u32 1.1754944e-38, %v603_v63  ;;  %vm501_vm9 = vmor %vm499_vm3, %vm500_vm8 }
 0x214   : > { %v497_v7 = vmul.f32 %v1337_v44, %v496_v61  ;;  %757 = vst.msk [vmem:[%s1894_s30 + $0x40] sm:$0xff] %vm748_vm13, %v2049_v8  ;;  %vm504_vm10 = vcmp.eq.f32.partialorder %v503_v58, 8.507059e+37  ;;  %v586_v17 = vsel %vm2058_vm1, %v1972_v12, %v582_v10  ;;  %vm2077_vm15 = vmor %vm527_vm14, %vm528_vm5  ;;  %v731_v12 = vadd.f32 %v2002_v34, %v1949_v1 }
 0x215   : > { %v596_v11 = vadd.f32 %v1335_v40, %v595_v0  ;;  %vm588_vm3 = vcmp.eq.f32.partialorder %v587_v47, 8.507059e+37  ;;  %v547_v35 = vand.u32 2147483648, %v2027_v42  ;;  %v670_v49 = vadd.s32 %v1802_v48, %v655_v15 }
 0x216   : > { %v498_v16 = vadd.f32 %v1337_v44, %v497_v7  ;;  %v591_v34 = vsel %vm588_vm3, %v590_v43, %v586_v17  ;;  %v530_v50 = vsel %vm2077_vm15, %v1956_v3, %v2011_v39  ;;  %v673_v61 = vadd.s32 %v1802_v48, %v658_v55 }
 0x217   : > { %v1339_v19 = vpop.eup %1338  ;;  %v600_v4 = vsel %vm599_vm4, %v1335_v40, %v596_v11  ;;  %v643_v21 = vpop.xlane.xlu1 %642  ;;  %vm541_vm4 = vweird.f32 %v2027_v42  ;;  %v548_v53 = vor.u32 1.1754944e-38, %v547_v35  ;;  %vm569_vm3 = vweird.f32 %v1933_v54 }
 0x218   : > { %v537_v22 = vmul.f32 %v1339_v19, %v2027_v42  ;;  %v502_v23 = vsel %vm501_vm9, %v1337_v44, %v498_v16  ;;  %v629_v26 = vpop.xlane.xlu2 %628  ;;  %v605_v28 = vsel %vm602_vm7, %v604_v13, %v600_v4  ;;  %vm688_vm2 = vcmp.eq.s32.totalorder %v1811_v59, %v643_v21 }
 0x219   : > { %v641_v32 = vpop.xlane.xlu0 %640  ;;  %v507_v33 = vsel %vm504_vm10, %v506_v20, %v502_v23  ;;  %vm681_vm0 = vcmp.eq.s32.totalorder %v1811_v59, %v629_v26  ;;  %v545_v44 = vand.u32 2147483647, %v2027_v42  ;;  %vm714_vm5 = vmand %vm688_vm2, %vm701_vm6  ;;  %v2090_v51 = vpop.eup %1340  ;;  %vm697_vm6 = vcmp.lt.s32.totalorder %v1994_v27, 200 }
 0x21a   : > { %vm687_vm8 = vcmp.eq.s32.totalorder %v1811_v59, %v641_v32  ;;  %v538_v40 = vsub.f32 1.0, %v537_v22  ;;  %vm707_vm1 = vmand %vm681_vm0, %vm694_vm12  ;;  %vm542_vm12 = vweird.f32 %v1339_v19  ;;  %v2094_v1 = vsel %vm714_vm5, %v605_v28, 0.0 }
 0x21b   : > { %v720_v46 = vsel %vm707_vm1, %v507_v33, 0.0  ;;  %vm713_vm14 = vmand %vm687_vm8, %vm700_vm11  ;;  %760 = vst.msk [vmem:[%s1894_s30 + $0x58] sm:$0xff] %vm748_vm13, %v2094_v1  ;;  %vm684_vm11 = vcmp.eq.s32.totalorder %v1811_v59, %v2035_v45  ;;  %v607_v41 = vmul.f32 %v2090_v51, %v1982_v18  ;;  %vm696_vm10 = vcmp.lt.s32.totalorder %v670_v49, 200 }
 0x21c   : > { %v539_v29 = vmul.f32 %v1339_v19, %v538_v40  ;;  %753 = vst.msk [vmem:[%s1894_s30 + $0x20] sm:$0xff] %vm748_vm13, %v720_v46  ;;  %v726_v47 = vsel %vm713_vm14, %v591_v34, 0.0  ;;  %v732_v24 = vadd.f32 %v731_v12, %v720_v46  ;;  %vm543_vm9 = vmor %vm541_vm4, %vm542_vm12  ;;  %vm546_vm7 = vcmp.eq.f32.partialorder %v545_v44, 8.507059e+37 }
 0x21d   : > { %759 = vst.msk [vmem:[%s1894_s30 + $0x50] sm:$0xff] %vm748_vm13, %v726_v47  ;;  %v534_v42 = vor.u32 1.1754944e-38, %v533_v31  ;;  %vm710_vm0 = vmand %vm684_vm11, %vm697_vm6  ;;  %vm532_vm2 = vcmp.eq.f32.partialorder %v531_v30, 8.507059e+37  ;;  %vm570_vm1 = vweird.f32 %v1968_v9  ;;  %v608_v60 = vsub.f32 1.0, %v607_v41 }
 0x21e   : > { %v540_v38 = vadd.f32 %v1339_v19, %v539_v29  ;;  %v733_v58 = vadd.f32 %v732_v24, %v1951_v2  ;;  %v568_v27 = vadd.f32 %v1968_v9, %v567_v36  ;;  %v573_v30 = vand.u32 2147483647, %v1933_v54  ;;  %vm571_vm5 = vmor %vm569_vm3, %vm570_vm1 }
 0x21f   : > { %v535_v57 = vsel %vm532_vm2, %v534_v42, %v530_v50  ;;  %v609_v63 = vmul.f32 %v2090_v51, %v608_v60  ;;  %vm699_vm12 = vcmp.lt.s32.totalorder %v673_v61, 200  ;;  %v661_v5 = vadd.s32 96, %v1791_v52 }
 0x220   : > { %v544_v3 = vsel %vm543_vm9, %v1339_v19, %v540_v38  ;;  %v633_v39 = vpop.xlane.xlu2 %632  ;;  %v572_v0 = vsel %vm571_vm5, %v1968_v9, %v568_v27  ;;  %v576_v7 = vor.u32 1.1754944e-38, %v575_v25  ;;  %vm574_vm14 = vcmp.eq.f32.partialorder %v573_v30, 8.507059e+37 }
 0x221   : > { %v549_v56 = vsel %vm546_vm7, %v548_v53, %v544_v3  ;;  %vm683_vm8 = vcmp.eq.s32.totalorder %v1811_v59, %v633_v39  ;;  %v676_v14 = vadd.s32 %v1802_v48, %v661_v5  ;;  %v610_v15 = vadd.f32 %v2090_v51, %v609_v63 }
 0x222   : > { %v723_v45 = vsel %vm710_vm0, %v549_v56, 0.0  ;;  %vm709_vm15 = vmand %vm683_vm8, %vm696_vm10  ;;  %v577_v10 = vsel %vm574_vm14, %v576_v7, %v572_v0  ;;  %vm612_vm11 = vweird.f32 %v2090_v51  ;;  %v617_v52 = vand.u32 2147483648, %v1982_v18 }
 0x223   : > { %756 = vst.msk [vmem:[%s1894_s30 + $0x38] sm:$0xff] %vm748_vm13, %v723_v45  ;;  %v722_v31 = vsel %vm709_vm15, %v535_v57, 0.0  ;;  %vm611_vm9 = vweird.f32 %v1982_v18  ;;  %v615_v9 = vand.u32 2147483647, %v1982_v18  ;;  %vm702_vm7 = vcmp.lt.s32.totalorder %v676_v14, 200 }
 0x224   : > { %v734_v62 = vadd.f32 %v733_v58, %v722_v31  ;;  %755 = vst.msk [vmem:[%s1894_s30 + $0x30] sm:$0xff] %vm748_vm13, %v722_v31  ;;  %vm613_vm10 = vmor %vm611_vm9, %vm612_vm11  ;;  %v618_v19 = vor.u32 1.1754944e-38, %v617_v52 }
 0x225   : > { %vm616_vm0 = vcmp.eq.f32.partialorder %v615_v9, 8.507059e+37 }
 0x226   : > { %v735_v2 = vadd.f32 %v734_v62, %v723_v45 }
 0x228   : > { %v639_v6 = vpop.xlane.xlu2 %638  ;;  %v736_v11 = vadd.f32 %v735_v2, %v2049_v8  ;;  %v614_v8 = vsel %vm613_vm10, %v2090_v51, %v610_v15 }
 0x229   : > { %vm686_vm6 = vcmp.eq.s32.totalorder %v1811_v59, %v639_v6  ;;  %v619_v20 = vsel %vm616_vm0, %v618_v19, %v614_v8 }
 0x22a   : > { %vm712_vm4 = vmand %vm686_vm6, %vm699_vm12 }
 0x22b   : > { %v725_v54 = vsel %vm712_vm4, %v577_v10, 0.0 }
 0x22c   : > { %v737_v16 = vadd.f32 %v736_v11, %v725_v54  ;;  %758 = vst.msk [vmem:[%s1894_s30 + $0x48] sm:$0xff] %vm748_vm13, %v725_v54 }
 0x22e   : > { %v738_v13 = vadd.f32 %v737_v16, %v726_v47 }
 0x230   : > { %v645_v48 = vpop.xlane.xlu2 %644  ;;  %v739_v4 = vadd.f32 %v738_v13, %v2094_v1 }
 0x231   : > { %vm689_vm2 = vcmp.eq.s32.totalorder %v1811_v59, %v645_v48 }
 0x232   : > { %vm715_vm8 = vmand %vm689_vm2, %vm702_vm7 }
 0x233   : > { %v728_v21 = vsel %vm715_vm8, %v619_v20, 0.0 }
 0x234   : > { %v740_v22 = vadd.f32 %v739_v4, %v728_v21  ;;  %761 = vst.msk [vmem:[%s1894_s30 + $0x60] sm:$0xff] %vm748_vm13, %v728_v21 }
 0x236   : > { %v741_v18 = vrot.slane %v740_v22, 4 }
 0x238   : > { %v742_v23 = vadd.f32 %v741_v18, %v740_v22 }
 0x23a   : > { %v743_v26 = vrot.slane %v742_v23, 2 }
 0x23c   : > { %v744_v28 = vadd.f32 %v743_v26, %v742_v23 }
 0x23e   : > { %v745_v17 = vrot.slane %v744_v28, 1  ;;  %772 = sbr.rel (!%p1636_p11) target bundleno = 639 (0x27f), region = 44 }
 0x240   : > { %v746_v32 = vadd.f32 %v745_v17, %v744_v28 }
 0x242   : > { %747 = vst [vmem:[%s247_s25] sm:$0x1] %v746_v32 }
 0x243   : > { %s2329_s23 = smov (!%p775_p6, %s774_s23), 13 }
 0x244   : > { %s1105_s5 = sshll.u32 %s2329_s23, 3 }
 0x245   : > { %p1108_p13 = scmp.eq.s32.totalorder %s1105_s5, 0 }
 0x246   : > { %1342 = sdivrem.u32 (!%p1108_p13), %s2329_s23, 13 }
 0x247   : > { %783 = sbr.rel (%p1108_p13) target bundleno = 639 (0x27f), region = 48 }
 0x24f   : > { %s2174_s13 = spop.drf %1342 }
 0x250   : > { %s1344_s1 = spop.drf %1342  ;;  %p1109_p2 = scmp.le.s32.totalorder %s2174_s13, 0 }
 0x251   : > { %s2314_s22 = smov (!%p1109_p2), %s2168_s11  ;;  %s2315_s9 = smov (!%p1109_p2), %s1894_s30 }
 0x252   : > { %1029 = sbr.rel (%p1109_p2) target bundleno = 613 (0x265), region = 147  ;;  %s2183_s6 = smov (!%p1109_p2), 0  }
 0x253   : > { %s2185_s26 = smov (!%p1109_p2), 0  }
 0x257 LB: >> { %v872_v59 = vld [vmem:[%s1527_s9] sm:$0xff]  ;;  %v874_v33 = vld [vmem:[%s1527_s9 + $0x8] sm:$0xff]  ;;  %v876_v37 = vld [vmem:[%s1527_s9 + $0x10] sm:$0xff]  ;;  %s898_s29 = sadd.s32 1, %s1531_s6  ;;  %s866_s26 = sadd.s32 1, %s1535_s26   ;;  %s1535_s26 = sphi %s2185_s26, %s866_s26   ;;  %s1531_s6 = sphi %s2183_s6, %s2318_s6   ;;  %s1527_s9 = sphi %s2315_s9, %s2317_s9   ;;  %s1523_s22 = sphi %s2314_s22, %s2316_s22  }
 0x258   : >> { %873 = vst [vmem:[%s1523_s22] sm:$0xff] %v872_v59  ;;  %v878_v40 = vld [vmem:[%s1527_s9 + $0x18] sm:$0xff]  ;;  %p899_p5 = scmp.ge.s32.totalorder %s898_s29, %s2174_s13  ;;  %v880_v12 = vld [vmem:[%s1527_s9 + $0x20] sm:$0xff]  ;;  %v882_v43 = vld [vmem:[%s1527_s9 + $0x28] sm:$0xff]  ;;  %p865_p9 = scmp.ge.s32.totalorder %s866_s26, %s2174_s13 }
 0x259   : >> { %875 = vst [vmem:[%s1523_s22 + $0x8] sm:$0xff] %v874_v33  ;;  %v884_v44 = vld [vmem:[%s1527_s9 + $0x30] sm:$0xff]  ;;  %v886_v35 = vld [vmem:[%s1527_s9 + $0x38] sm:$0xff]  ;;  %v888_v46 = vld [vmem:[%s1527_s9 + $0x40] sm:$0xff] }
 0x25a   : >> { %877 = vst [vmem:[%s1523_s22 + $0x10] sm:$0xff] %v876_v37  ;;  %s2331_s29 = smov (%p899_p5, %s898_s29), 0  ;;  %v890_v49 = vld [vmem:[%s1527_s9 + $0x48] sm:$0xff]  ;;  %v892_v51 = vld [vmem:[%s1527_s9 + $0x50] sm:$0xff]  ;;  %v894_v29 = vld [vmem:[%s1527_s9 + $0x58] sm:$0xff] }
 0x25b   : >> { %879 = vst [vmem:[%s1523_s22 + $0x18] sm:$0xff] %v878_v40  ;;  %s901_s14 = smul.u32 104, %s2331_s29  ;;  %v896_v1 = vld [vmem:[%s1527_s9 + $0x60] sm:$0xff]  ;;  %s2318_s6 = smov %s2331_s29 }
 0x25c   : >> { %881 = vst [vmem:[%s1523_s22 + $0x20] sm:$0xff] %v880_v12 }
 0x25d   : >> { %883 = vst [vmem:[%s1523_s22 + $0x28] sm:$0xff] %v882_v43  ;;  %s903_s8 = scalar_lea.vmem %s1894_s30, %s901_s14 [#allocation7]   ;;  %s904_s12 = scalar_lea.vmem %s2168_s11, %s901_s14  }
 0x25e   : >> { %885 = vst [vmem:[%s1523_s22 + $0x30] sm:$0xff] %v884_v44  ;;  %s2317_s9 = smov %s903_s8 }
 0x25f   : >> { %887 = vst [vmem:[%s1523_s22 + $0x38] sm:$0xff] %v886_v35 }
 0x260   : >> { %889 = vst [vmem:[%s1523_s22 + $0x40] sm:$0xff] %v888_v46  ;;  %868 = sbr.rel (!%p865_p9) target bundleno = 599 (0x257), region = 153 }
 0x261   : >> { %891 = vst [vmem:[%s1523_s22 + $0x48] sm:$0xff] %v890_v49 }
 0x262   : >> { %893 = vst [vmem:[%s1523_s22 + $0x50] sm:$0xff] %v892_v51 }
 0x263   : >> { %895 = vst [vmem:[%s1523_s22 + $0x58] sm:$0xff] %v894_v29 }
 0x264   : >> { %897 = vst [vmem:[%s1523_s22 + $0x60] sm:$0xff] %v896_v1  ;;  %s2316_s22 = smov %s904_s12 }
 0x265 PF: > { %1345 = sdivrem.u32 %s2329_s23, 13 }
 0x266   : > { %s1110_s10 = smul.u32 104, %s2174_s13 }
 0x268   : > { %s2239_s5 = scalar_lea.vmem %s1894_s30, %s1110_s10 [#allocation7]   ;;  %s911_s1 = scalar_lea.vmem %s2168_s11, %s1110_s10  }
 0x26e   : > { %s1346_s14 = spop.drf %1345 }
 0x26f   : > { %s1347_s7 = spop.drf %1345 }
 0x270   : > { %p1112_p10 = scmp.le.s32.totalorder %s1347_s7, 0 }
 0x271   : > { %s1537_s8 = smov (!%p1112_p10), %s911_s1   ;;  %s1541_s29 = smov (!%p1112_p10), %s2239_s5  }
 0x272   : > { %1043 = sbr.rel (%p1112_p10) target bundleno = 639 (0x27f), region = 158  ;;  %s1545_s12 = smov (!%p1112_p10), 0  }
 0x273   : > { %s1549_s26 = smov (!%p1112_p10), 0  }
 0x277 LB: >> { %v921_v34 = vld [vmem:[%s1543_s29] sm:$0xff]  ;;  %s923_s30 = sadd.s32 1, %s1547_s12  ;;  %s915_s26 = sadd.s32 1, %s1551_s26   ;;  %s1551_s26 = sphi %s1549_s26, %s915_s26   ;;  %s1547_s12 = sphi %s1545_s12, %s1546_s12   ;;  %s1543_s29 = sphi %s1541_s29, %s928_s29   ;;  %s1539_s8 = sphi %s1537_s8, %s929_s8  }
 0x278   : >> { %922 = vst [vmem:[%s1539_s8] sm:$0xff] %v921_v34  ;;  %p924_p1 = scmp.ge.s32.totalorder %s923_s30, %s1347_s7  ;;  %p914_p0 = scmp.ge.s32.totalorder %s915_s26, %s1347_s7 }
 0x27a   : >> { %s2333_s30 = smov (%p924_p1, %s923_s30), 0  ;;  %917 = sbr.rel (!%p914_p0) target bundleno = 631 (0x277), region = 164 }
 0x27b   : >> { %s1113_s11 = sshll.u32 %s2333_s30, 3  ;;  %s1546_s12 = smov %s2333_s30  }
 0x27c   : >> { %s928_s29 = scalar_lea.vmem %s2239_s5, %s1113_s11 [#allocation7]   ;;  %s929_s8 = scalar_lea.vmem %s911_s1, %s1113_s11  }
 0x27f PF: > { %s938_s22 = scalar_lea.hbm %s2284_s4, %s1605_s19  ;;  %s940_s9 = sshll.u32 %s247_s25, 4  ;;  %s941_s9 = int_to_ptr.vmem [resolvable:$true] %s940_s9 }
 0x280   : > { %s942_s6 = sshll.u32 %s938_s22, 4  ;;  %s1437_s1 = scalar_lea.hbm %s2284_s4, 2  ;;  %s943_s6 = int_to_ptr.hbm [resolvable:$true] %s942_s6 }
 0x281   : > { %s1431_s10 = sshra.s32 %s943_s6, 4  ;;  %s1432_s10 = int_to_ptr.hbm [resolvable:$true] %s1431_s10 }
 0x282   : > { %s1433_s14 = scalar_lea.hbm %s1432_s10, 1  ;;  %p1438_p4 = scmp.lt.s32.totalorder %s1432_s10, %s2284_s4 }
 0x283   : > { %p1434_p3 = scmp.ne.s32.totalorder %s1432_s10, %s1433_s14  ;;  %p1439_p12 = scmp.lt.s32.totalorder %s1437_s1, %s1433_s14 }
 0x285   : > { %p1435_p7 = pnand %p1434_p3, %p1636_p11  ;;  %p1440_p6 = por %p1439_p12, %p1438_p4 }
 0x287   : > { %p1436_p8 = pneg %p1435_p7 }
 0x289   : > { %p1441_p13 = pnand %p1440_p6, %p1436_p8 }
 0x28b   : > { %1444 = shalt.err (!%p1441_p13)
}
 0x28c   : > { %s2319_s19 = scalar_lea.sflag [#allocation4], %s1708_s20 }
 0x28d   : > { %1174 = dma.vmem_to_hbm [thread:$0]  (%p1636_p11), %s941_s9, 16, %s943_s6, %s2319_s19  }
 0x28e PF: > { %s961_s25 = sand.u32 1, %s1507_s15   ;;  %p2320_p2 = scmp.ne.s32.totalorder %s2291_s28, 0 }
 0x28f   : > { %p2321_p5 = scmp.ge.s32.totalorder %s1519_s18, 2  ;;  %s962_s12 = scalar_lea.sflag [#allocation4], %s961_s25 }
 0x291   : > { %p1181_p9 = pnand %p2321_p5, %p2320_p2 }
 0x293   : > { %p1182_p10 = pneg %p1181_p9 }
 0x295   : > { %1502 = dma.done.wait (%p1182_p10), %s962_s12, 16  }
 0x296   : > { %1504 = vsyncadd (%p1182_p10), %s962_s12, 4294967280  ;;  %p19_p1 = scmp.ge.s32.totalorder %s1609_s21, 4   ;;  %s2322_s15 = smov %s1511_s16 }
 0x297   : > { %s2323_s16 = smov %s1515_s17  ;;  %s2324_s17 = smov %s1621_s24 }
 0x298   : > { %s2325_s18 = smov %s1609_s21  ;;  %21 = sbr.rel (!%p19_p1) target bundleno = 8 (0x8), region = 175 }
 0x29d   :  { %967 = vsyncpa [#allocation3], 1 }
 0x29e   :  { %969 = vsyncpa [#allocation3 + $0x1], 1 }
 0x29f   :  { %970 = vsyncpa [#allocation6], 1 }
 0x2a0   :  { %971 = vsyncpa [#allocation4], 1 }
 0x2a1   :  { %973 = vsyncpa [#allocation4 + $0x1], 1 }

</bundles_post_ra>
